<compile_context>
chip_gen: v7x
topology: tpu7x:2x2x1
jax: 0.10.0
libtpu: 0.0.40
codegen_flags: <defaults>
</compile_context>

<pallas_src>
import jax
import jax.numpy as jnp
from jax import lax
from jax.experimental import pallas as pl
from jax.experimental.pallas import tpu as pltpu


def _round_up(x, m):
    return (x + m - 1) // m * m


def egnn_kernel(xn_ref, wn_ref, aq_ref, ak_ref, rep_ref, wox_ref, woa_ref,
                bias_ref, g_ref, s_ref, gate_ref, eatt_ref, out_ref,
                xp_sc, xpbf_sc, kibf_sc, acc_sc):
    k = pl.program_id(0)

    # ---- once, on the first edge chunk: node transform + per-node key scalar
    @pl.when(k == 0)
    def _init():
        xp = jnp.dot(xn_ref[...], wn_ref[...],
                     preferred_element_type=jnp.float32)          # [N, B*O]
        xp_sc[...] = xp
        xpbf_sc[...] = xp.astype(jnp.bfloat16)
        ki = jnp.dot(xp, ak_ref[...],
                     preferred_element_type=jnp.float32)          # [N, B]
        kibf_sc[...] = ki.astype(jnp.bfloat16)
        acc_sc[...] = jnp.zeros_like(acc_sc)

    g = g_ref[...]                                                # [cE, N] bf16
    s = s_ref[...]                                                # [cE, N] bf16

    # gather x_j (the only full-width gather); query term derived from x_j
    x_j = jnp.dot(g, xpbf_sc[...],
                  preferred_element_type=jnp.float32)             # [cE, B*O]
    qj = jnp.dot(x_j, aq_ref[...],
                 preferred_element_type=jnp.float32)              # [cE, B]
    # per-edge key scalar: gather the precomputed [N,B] slab instead of x_i
    ki = jnp.dot(s, kibf_sc[...],
                 preferred_element_type=jnp.float32)              # [cE, B]

    att = jax.nn.sigmoid(qj + ki + eatt_ref[...])                 # [cE, B]
    att_rep = jnp.dot(att, rep_ref[...],
                      preferred_element_type=jnp.float32)         # [cE, B*O]
    msg = (att_rep * gate_ref[...] * x_j).astype(jnp.bfloat16)    # [cE, B*O]

    # scatter-add over target nodes: contract the edge dim of S (no S^T)
    acc_sc[...] += lax.dot_general(
        s, msg, dimension_numbers=(((0,), (0,)), ((), ())),
        preferred_element_type=jnp.float32)                       # [N, B*O]

    # ---- once, on the last chunk: output linear + residual
    @pl.when(k == pl.num_programs(0) - 1)
    def _finalize():
        xp = xp_sc[...]
        upd = (jnp.dot(xp, wox_ref[...], preferred_element_type=jnp.float32)
               + jnp.dot(acc_sc[...], woa_ref[...],
                         preferred_element_type=jnp.float32)
               + bias_ref[...])
        out_ref[...] = (xp + upd).astype(out_ref.dtype)


def egnn_net_pallas(x, edge_index, edge_weight, params, *, edge_chunk=512):
    """x: [N, B, C_in]  edge_index: [2, E]  edge_weight: [E]  ->  [N, B, O]."""
    N, B, C = x.shape
    E = edge_index.shape[1]
    O = params["weight_n"].shape[1]
    BO = B * O

    # ---- edge-dimension chunking (grid axis) --------------------------------
    if E <= edge_chunk:
        chunk = _round_up(max(E, 8), 8)
    else:
        chunk = _round_up(edge_chunk, 8)
    E_pad = _round_up(E, chunk)
    pad = E_pad - E

    src = edge_index[0].astype(jnp.int32)
    tgt = edge_index[1].astype(jnp.int32)
    ew = edge_weight.astype(jnp.float32)
    if pad:
        neg = jnp.full((pad,), -1, jnp.int32)      # one_hot(-1) == all-zero row
        src = jnp.concatenate([src, neg])
        tgt = jnp.concatenate([tgt, neg])
        ew = jnp.concatenate([ew, jnp.zeros((pad,), jnp.float32)])

    # ---- batch-invariant glue (hoisted out of the kernel) --------------------
    G = jax.nn.one_hot(src, N, dtype=jnp.bfloat16)           # [E_pad, N]
    S = jax.nn.one_hot(tgt, N, dtype=jnp.bfloat16)           # [E_pad, N]
    ef = ew[:, None]                                         # [E_pad, 1]
    edge_emb = ef @ params["weight_e"].astype(jnp.float32)   # [E_pad, O]
    gate_slab = jnp.tile(jax.nn.sigmoid(edge_emb), (1, B))   # [E_pad, B*O]

    w_att = params["att_w"].astype(jnp.float32)              # [1, 3O]
    w_q, w_k, w_e = w_att[0, :O], w_att[0, O:2 * O], w_att[0, 2 * O:]
    e_att = edge_emb @ w_e[:, None] + params["att_b"]        # [E_pad, 1]

    eyeB = jnp.eye(B, dtype=jnp.float32)
    Wn_blk = jnp.kron(eyeB, params["weight_n"].astype(jnp.float32))  # [B*C, B*O]
    Aq = jnp.kron(eyeB, (params["query"] @ w_q)[:, None])    # [B*O, B]
    Ak = jnp.kron(eyeB, (params["key"] @ w_k)[:, None])      # [B*O, B]
    rep = jnp.kron(eyeB, jnp.ones((1, O), jnp.float32))      # [B, B*O]
    Wo = params["out_w"].astype(jnp.float32)                 # [O, 2O]
    Wox_blk = jnp.kron(eyeB, Wo[:, :O].T)                    # [B*O, B*O]
    Woa_blk = jnp.kron(eyeB, Wo[:, O:].T)                    # [B*O, B*O]
    bias_slab = jnp.tile(params["out_b"].astype(jnp.float32), B)[None, :]

    Xn = x.reshape(N, B * C).astype(jnp.float32)             # [N, B*C]

    grid = (E_pad // chunk,)
    const = lambda k: (0, 0)
    echunk = lambda k: (k, 0)

    out_slab = pl.pallas_call(
        egnn_kernel,
        out_shape=jax.ShapeDtypeStruct((N, BO), jnp.float32),
        grid_spec=pltpu.PrefetchScalarGridSpec(
            num_scalar_prefetch=0,
            grid=grid,
            in_specs=[
                pl.BlockSpec((N, B * C), const),     # Xn
                pl.BlockSpec((B * C, BO), const),    # Wn block-diag
                pl.BlockSpec((BO, B), const),        # Q w_q block-diag
                pl.BlockSpec((BO, B), const),        # K w_k block-diag
                pl.BlockSpec((B, BO), const),        # lane-broadcast matrix
                pl.BlockSpec((BO, BO), const),       # W_out (x part) block-diag
                pl.BlockSpec((BO, BO), const),       # W_out (aggr part) block-diag
                pl.BlockSpec((1, BO), const),        # bias
                pl.BlockSpec((chunk, N), echunk),    # G (bf16)
                pl.BlockSpec((chunk, N), echunk),    # S (bf16)
                pl.BlockSpec((chunk, BO), echunk),   # gate slab
                pl.BlockSpec((chunk, 1), echunk),    # e_att
            ],
            out_specs=pl.BlockSpec((N, BO), const),
            scratch_shapes=[
                pltpu.VMEM((N, BO), jnp.float32),    # x' (f32)
                pltpu.VMEM((N, BO), jnp.bfloat16),   # x' (bf16, for gathers)
                pltpu.VMEM((N, B), jnp.bfloat16),    # per-node key scalar
                pltpu.VMEM((N, BO), jnp.float32),    # aggr accumulator
            ]),
        compiler_params=pltpu.CompilerParams(
            dimension_semantics=("arbitrary",),
            vmem_limit_bytes=48 * 1024 * 1024),
    )(Xn, Wn_blk, Aq, Ak, rep, Wox_blk, Woa_blk, bias_slab,
      G, S, gate_slab, e_att)

    return out_slab.reshape(N, B, O)


def egnn_net_reference(x, edge_index, edge_weight, params):
    """Pure-JAX f32 reference matching the PyTorch forward (node_dim=0)."""
    N, B, C = x.shape
    O = params["weight_n"].shape[1]
    src, tgt = edge_index[0], edge_index[1]
    xp = x @ params["weight_n"]                                  # [N,B,O]
    edge_emb = edge_weight[:, None] @ params["weight_e"]         # [E,O]
    x_j = xp[src]                                                # [E,B,O]
    x_i = xp[tgt]                                                # [E,B,O]
    query = x_j @ params["query"]
    key = x_i @ params["key"]
    ee = jnp.broadcast_to(edge_emb[:, None, :], query.shape)     # [E,B,O]
    att_in = jnp.concatenate([query, key, ee], axis=-1)          # [E,B,3O]
    att = jax.nn.sigmoid(att_in @ params["att_w"].T + params["att_b"])
    gate = jax.nn.sigmoid(ee)
    msg = att * x_j * gate                                       # [E,B,O]
    aggr = jax.ops.segment_sum(msg, tgt, num_segments=N)         # [N,B,O]
    h = jnp.concatenate([xp, aggr], axis=-1)                     # [N,B,2O]
    upd = h @ params["out_w"].T + params["out_b"]
    return xp + upd


def init_params(key, in_channels, out_channels):
    C, O = in_channels, out_channels
    ks = jax.random.split(key, 8)

    def xavier(k, shape):
        bound = (6.0 / (shape[0] + shape[1])) ** 0.5
        return jax.random.uniform(k, shape, jnp.float32, -bound, bound)

    weight_n = xavier(ks[0], (C, O))
    weight_e = xavier(ks[1], (1, O))
    query = xavier(ks[2], (O, O))
    key_m = xavier(ks[3], (O, O))
    ba = 1.0 / (3 * O) ** 0.5
    att_w = jax.random.uniform(ks[4], (1, 3 * O), jnp.float32, -ba, ba)
    att_b = jax.random.uniform(ks[5], (1,), jnp.float32, -ba, ba)
    bo = 1.0 / (2 * O) ** 0.5
    out_w = jax.random.uniform(ks[6], (O, 2 * O), jnp.float32, -bo, bo)
    out_b = jax.random.uniform(ks[7], (O,), jnp.float32, -bo, bo)
    return dict(weight_n=weight_n, weight_e=weight_e, query=query, key=key_m,
                att_w=att_w, att_b=att_b, out_w=out_w, out_b=out_b)


if __name__ == "__main__":
    # N nodes, B batch, C_in channels, O out_channels, E edges
    N, B, C, O, E = 16, 2, 4, 8, 24

    key = jax.random.PRNGKey(0)
    kx, ke, kw, kp = jax.random.split(key, 4)

    x = jax.random.normal(kx, (N, B, C), jnp.float32)
    edge_index = jax.random.randint(ke, (2, E), 0, N, jnp.int32)
    edge_weight = jax.random.uniform(kw, (E,), jnp.float32)
    params = init_params(kp, C, O)

    out = egnn_net_pallas(x, edge_index, edge_weight, params)
    out = jax.block_until_ready(out)

    ref = egnn_net_reference(x, edge_index, edge_weight, params)
    assert out.shape == (N, B, O)
    # bf16 incidence/gather path -> allow mixed-precision tolerance
    err = float(jnp.max(jnp.abs(out - ref)))
    assert jnp.allclose(out, ref, rtol=2e-2, atol=2e-2), \
        f"mismatch vs reference (max abs err {err})"

    # TODO(synk): normalize='bn'/'ln'/'vn' branches of MyEGNNConv are not
    # exercised by MyEGNNNet (normalize defaults to 'none') and are omitted.
    print("KERNEL_OK")
</pallas_src>

<mosaic_0001>
module attributes {stable_mosaic.version = 11 : i64} {
  func.func @egnn_kernel(%arg0: i32, %arg1: memref<16x8xf32, #tpu.memory_space<vmem>>, %arg2: memref<8x16xf32, #tpu.memory_space<vmem>>, %arg3: memref<16x2xf32, #tpu.memory_space<vmem>>, %arg4: memref<16x2xf32, #tpu.memory_space<vmem>>, %arg5: memref<2x16xf32, #tpu.memory_space<vmem>>, %arg6: memref<16x16xf32, #tpu.memory_space<vmem>>, %arg7: memref<16x16xf32, #tpu.memory_space<vmem>>, %arg8: memref<1x16xf32, #tpu.memory_space<vmem>>, %arg9: memref<24x16xbf16, #tpu.memory_space<vmem>>, %arg10: memref<24x16xbf16, #tpu.memory_space<vmem>>, %arg11: memref<24x16xf32, #tpu.memory_space<vmem>>, %arg12: memref<24x1xf32, #tpu.memory_space<vmem>>, %arg13: memref<16x16xf32, #tpu.memory_space<vmem>>, %arg14: memref<16x16xf32, #tpu.memory_space<vmem>>, %arg15: memref<16x16xbf16, #tpu.memory_space<vmem>>, %arg16: memref<16x2xbf16, #tpu.memory_space<vmem>>, %arg17: memref<16x16xf32, #tpu.memory_space<vmem>>) attributes {dimension_semantics = [#tpu.dimension_semantics<arbitrary>], iteration_bounds = array<i64: 1>, scalar_prefetch = 0 : i64, scratch_operands = 4 : i64, tpu.core_type = #tpu.core_type<tc>, window_params = [{pipeline_mode = #tpu.pipeline_mode<synchronous>, transform_indices = @transform_0, window_bounds = array<i64: 16, 8>}, {pipeline_mode = #tpu.pipeline_mode<synchronous>, transform_indices = @transform_1, window_bounds = array<i64: 8, 16>}, {pipeline_mode = #tpu.pipeline_mode<synchronous>, transform_indices = @transform_2, window_bounds = array<i64: 16, 2>}, {pipeline_mode = #tpu.pipeline_mode<synchronous>, transform_indices = @transform_3, window_bounds = array<i64: 16, 2>}, {pipeline_mode = #tpu.pipeline_mode<synchronous>, transform_indices = @transform_4, window_bounds = array<i64: 2, 16>}, {pipeline_mode = #tpu.pipeline_mode<synchronous>, transform_indices = @transform_5, window_bounds = array<i64: 16, 16>}, {pipeline_mode = #tpu.pipeline_mode<synchronous>, transform_indices = @transform_6, window_bounds = array<i64: 16, 16>}, {pipeline_mode = #tpu.pipeline_mode<synchronous>, transform_indices = @transform_7, window_bounds = array<i64: 1, 16>}, {transform_indices = @transform_8, window_bounds = array<i64: 24, 16>}, {transform_indices = @transform_9, window_bounds = array<i64: 24, 16>}, {transform_indices = @transform_10, window_bounds = array<i64: 24, 16>}, {transform_indices = @transform_11, window_bounds = array<i64: 24, 1>}, {pipeline_mode = #tpu.pipeline_mode<synchronous>, transform_indices = @transform_12, window_bounds = array<i64: 16, 16>}]} {
    %c0_i32 = arith.constant 0 : i32
    %0 = arith.cmpi eq, %arg0, %c0_i32 : i32
    %1 = arith.extui %0 : i1 to i32
    %c0_i32_0 = arith.constant 0 : i32
    %2 = arith.cmpi ne, %1, %c0_i32_0 : i32
    scf.if %2 {
      %c0_27 = arith.constant 0 : index
      %c0_28 = arith.constant 0 : index
      %33 = vector.load %arg1[%c0_27, %c0_28] : memref<16x8xf32, #tpu.memory_space<vmem>>, vector<16x8xf32>
      %c0_29 = arith.constant 0 : index
      %c0_30 = arith.constant 0 : index
      %34 = vector.load %arg2[%c0_29, %c0_30] : memref<8x16xf32, #tpu.memory_space<vmem>>, vector<8x16xf32>
      %cst_31 = arith.constant dense<0.000000e+00> : vector<16x16xf32>
      %35 = tpu.matmul %33, %34, %cst_31 {dimension_numbers = #tpu.dot_dimension_numbers<[1], [0], [0], [1], [0, 0, 1, 1], [], []>} : vector<16x8xf32>, vector<8x16xf32>, vector<16x16xf32> -> vector<16x16xf32>
      %c0_32 = arith.constant 0 : index
      %c0_33 = arith.constant 0 : index
      %36 = vector.load %arg14[%c0_32, %c0_33] : memref<16x16xf32, #tpu.memory_space<vmem>>, vector<16x16xf32>
      tpu.vector_store %arg14[%c0_32, %c0_33], %35 {strides = array<i32>} : memref<16x16xf32, #tpu.memory_space<vmem>>, vector<16x16xf32>,
      %37 = arith.truncf %35 : vector<16x16xf32> to vector<16x16xbf16>
      %c0_34 = arith.constant 0 : index
      %c0_35 = arith.constant 0 : index
      %38 = vector.load %arg15[%c0_34, %c0_35] : memref<16x16xbf16, #tpu.memory_space<vmem>>, vector<16x16xbf16>
      tpu.vector_store %arg15[%c0_34, %c0_35], %37 {strides = array<i32>} : memref<16x16xbf16, #tpu.memory_space<vmem>>, vector<16x16xbf16>,
      %c0_36 = arith.constant 0 : index
      %c0_37 = arith.constant 0 : index
      %39 = vector.load %arg4[%c0_36, %c0_37] : memref<16x2xf32, #tpu.memory_space<vmem>>, vector<16x2xf32>
      %cst_38 = arith.constant dense<0.000000e+00> : vector<16x2xf32>
      %40 = tpu.matmul %35, %39, %cst_38 {dimension_numbers = #tpu.dot_dimension_numbers<[1], [0], [0], [1], [0, 0, 1, 1], [], []>} : vector<16x16xf32>, vector<16x2xf32>, vector<16x2xf32> -> vector<16x2xf32>
      %41 = arith.truncf %40 : vector<16x2xf32> to vector<16x2xbf16>
      %c0_39 = arith.constant 0 : index
      %c0_40 = arith.constant 0 : index
      %42 = vector.load %arg16[%c0_39, %c0_40] : memref<16x2xbf16, #tpu.memory_space<vmem>>, vector<16x2xbf16>
      tpu.vector_store %arg16[%c0_39, %c0_40], %41 {strides = array<i32>} : memref<16x2xbf16, #tpu.memory_space<vmem>>, vector<16x2xbf16>,
      %cst_41 = arith.constant 0.000000e+00 : f32
      %43 = vector.broadcast %cst_41 : f32 to vector<16x16xf32>
      %c0_42 = arith.constant 0 : index
      %c0_43 = arith.constant 0 : index
      %44 = vector.load %arg17[%c0_42, %c0_43] : memref<16x16xf32, #tpu.memory_space<vmem>>, vector<16x16xf32>
      tpu.vector_store %arg17[%c0_42, %c0_43], %43 {strides = array<i32>} : memref<16x16xf32, #tpu.memory_space<vmem>>, vector<16x16xf32>,
    } else {
    }
    %c0 = arith.constant 0 : index
    %c0_1 = arith.constant 0 : index
    %3 = vector.load %arg9[%c0, %c0_1] : memref<24x16xbf16, #tpu.memory_space<vmem>>, vector<24x16xbf16>
    %c0_2 = arith.constant 0 : index
    %c0_3 = arith.constant 0 : index
    %4 = vector.load %arg10[%c0_2, %c0_3] : memref<24x16xbf16, #tpu.memory_space<vmem>>, vector<24x16xbf16>
    %c0_4 = arith.constant 0 : index
    %c0_5 = arith.constant 0 : index
    %5 = vector.load %arg15[%c0_4, %c0_5] : memref<16x16xbf16, #tpu.memory_space<vmem>>, vector<16x16xbf16>
    %cst = arith.constant dense<0.000000e+00> : vector<24x16xf32>
    %6 = tpu.matmul %3, %5, %cst {dimension_numbers = #tpu.dot_dimension_numbers<[1], [0], [0], [1], [0, 0, 1, 1], [], []>} : vector<24x16xbf16>, vector<16x16xbf16>, vector<24x16xf32> -> vector<24x16xf32>
    %c0_6 = arith.constant 0 : index
    %c0_7 = arith.constant 0 : index
    %7 = vector.load %arg3[%c0_6, %c0_7] : memref<16x2xf32, #tpu.memory_space<vmem>>, vector<16x2xf32>
    %cst_8 = arith.constant dense<0.000000e+00> : vector<24x2xf32>
    %8 = tpu.matmul %6, %7, %cst_8 {dimension_numbers = #tpu.dot_dimension_numbers<[1], [0], [0], [1], [0, 0, 1, 1], [], []>} : vector<24x16xf32>, vector<16x2xf32>, vector<24x2xf32> -> vector<24x2xf32>
    %c0_9 = arith.constant 0 : index
    %c0_10 = arith.constant 0 : index
    %9 = vector.load %arg16[%c0_9, %c0_10] : memref<16x2xbf16, #tpu.memory_space<vmem>>, vector<16x2xbf16>
    %cst_11 = arith.constant dense<0.000000e+00> : vector<24x2xf32>
    %10 = tpu.matmul %4, %9, %cst_11 {dimension_numbers = #tpu.dot_dimension_numbers<[1], [0], [0], [1], [0, 0, 1, 1], [], []>} : vector<24x16xbf16>, vector<16x2xbf16>, vector<24x2xf32> -> vector<24x2xf32>
    %11 = arith.addf %8, %10 : vector<24x2xf32>
    %c0_12 = arith.constant 0 : index
    %c0_13 = arith.constant 0 : index
    %12 = vector.load %arg12[%c0_12, %c0_13] : memref<24x1xf32, #tpu.memory_space<vmem>>, vector<24x1xf32>
    %13 = vector.broadcast %12 : vector<24x1xf32> to vector<24x2xf32>
    %14 = arith.addf %11, %13 : vector<24x2xf32>
    %15 = arith.negf %14 : vector<24x2xf32>
    %16 = math.exp %15 : vector<24x2xf32>
    %cst_14 = arith.constant 1.000000e+00 : f32
    %17 = vector.broadcast %cst_14 : f32 to vector<24x2xf32>
    %18 = arith.addf %17, %16 : vector<24x2xf32>
    %19 = arith.divf %17, %18 : vector<24x2xf32>
    %c0_15 = arith.constant 0 : index
    %c0_16 = arith.constant 0 : index
    %20 = vector.load %arg5[%c0_15, %c0_16] : memref<2x16xf32, #tpu.memory_space<vmem>>, vector<2x16xf32>
    %cst_17 = arith.constant dense<0.000000e+00> : vector<24x16xf32>
    %21 = tpu.matmul %19, %20, %cst_17 {dimension_numbers = #tpu.dot_dimension_numbers<[1], [0], [0], [1], [0, 0, 1, 1], [], []>} : vector<24x2xf32>, vector<2x16xf32>, vector<24x16xf32> -> vector<24x16xf32>
    %c0_18 = arith.constant 0 : index
    %c0_19 = arith.constant 0 : index
    %22 = vector.load %arg11[%c0_18, %c0_19] : memref<24x16xf32, #tpu.memory_space<vmem>>, vector<24x16xf32>
    %23 = arith.mulf %21, %22 : vector<24x16xf32>
    %24 = arith.mulf %23, %6 : vector<24x16xf32>
    %25 = arith.truncf %24 : vector<24x16xf32> to vector<24x16xbf16>
    %c0_20 = arith.constant 0 : index
    %c0_21 = arith.constant 0 : index
    %26 = vector.load %arg17[%c0_20, %c0_21] : memref<16x16xf32, #tpu.memory_space<vmem>>, vector<16x16xf32>
    %cst_22 = arith.constant dense<0.000000e+00> : vector<16x16xf32>
    %27 = tpu.matmul %4, %25, %cst_22 {dimension_numbers = #tpu.dot_dimension_numbers<[0], [0], [1], [1], [0, 1, 1, 1], [], []>} : vector<24x16xbf16>, vector<24x16xbf16>, vector<16x16xf32> -> vector<16x16xf32>
    %28 = arith.addf %26, %27 : vector<16x16xf32>
    %c0_23 = arith.constant 0 : index
    %c0_24 = arith.constant 0 : index
    %29 = vector.load %arg17[%c0_23, %c0_24] : memref<16x16xf32, #tpu.memory_space<vmem>>, vector<16x16xf32>
    tpu.vector_store %arg17[%c0_23, %c0_24], %28 {strides = array<i32>} : memref<16x16xf32, #tpu.memory_space<vmem>>, vector<16x16xf32>,
    %c0_i32_25 = arith.constant 0 : i32
    %30 = arith.cmpi eq, %arg0, %c0_i32_25 : i32
    %31 = arith.extui %30 : i1 to i32
    %c0_i32_26 = arith.constant 0 : i32
    %32 = arith.cmpi ne, %31, %c0_i32_26 : i32
    scf.if %32 {
      %c0_27 = arith.constant 0 : index
      %c0_28 = arith.constant 0 : index
      %33 = vector.load %arg14[%c0_27, %c0_28] : memref<16x16xf32, #tpu.memory_space<vmem>>, vector<16x16xf32>
      %c0_29 = arith.constant 0 : index
      %c0_30 = arith.constant 0 : index
      %34 = vector.load %arg6[%c0_29, %c0_30] : memref<16x16xf32, #tpu.memory_space<vmem>>, vector<16x16xf32>
      %cst_31 = arith.constant dense<0.000000e+00> : vector<16x16xf32>
      %35 = tpu.matmul %33, %34, %cst_31 {dimension_numbers = #tpu.dot_dimension_numbers<[1], [0], [0], [1], [0, 0, 1, 1], [], []>} : vector<16x16xf32>, vector<16x16xf32>, vector<16x16xf32> -> vector<16x16xf32>
      %c0_32 = arith.constant 0 : index
      %c0_33 = arith.constant 0 : index
      %36 = vector.load %arg17[%c0_32, %c0_33] : memref<16x16xf32, #tpu.memory_space<vmem>>, vector<16x16xf32>
      %c0_34 = arith.constant 0 : index
      %c0_35 = arith.constant 0 : index
      %37 = vector.load %arg7[%c0_34, %c0_35] : memref<16x16xf32, #tpu.memory_space<vmem>>, vector<16x16xf32>
      %cst_36 = arith.constant dense<0.000000e+00> : vector<16x16xf32>
      %38 = tpu.matmul %36, %37, %cst_36 {dimension_numbers = #tpu.dot_dimension_numbers<[1], [0], [0], [1], [0, 0, 1, 1], [], []>} : vector<16x16xf32>, vector<16x16xf32>, vector<16x16xf32> -> vector<16x16xf32>
      %39 = arith.addf %35, %38 : vector<16x16xf32>
      %c0_37 = arith.constant 0 : index
      %c0_38 = arith.constant 0 : index
      %40 = vector.load %arg8[%c0_37, %c0_38] : memref<1x16xf32, #tpu.memory_space<vmem>>, vector<1x16xf32>
      %41 = vector.broadcast %40 : vector<1x16xf32> to vector<16x16xf32>
      %42 = arith.addf %39, %41 : vector<16x16xf32>
      %43 = arith.addf %33, %42 : vector<16x16xf32>
      %c0_39 = arith.constant 0 : index
      %c0_40 = arith.constant 0 : index
      %44 = vector.load %arg13[%c0_39, %c0_40] : memref<16x16xf32, #tpu.memory_space<vmem>>, vector<16x16xf32>
      tpu.vector_store %arg13[%c0_39, %c0_40], %43 {strides = array<i32>} : memref<16x16xf32, #tpu.memory_space<vmem>>, vector<16x16xf32>,
    } else {
    }
    return
  }
  func.func @transform_0(%arg0: i32) -> (i32, i32) {
    %c0_i32 = arith.constant 0 : i32
    %c0_i32_0 = arith.constant 0 : i32
    %c0_i32_1 = arith.constant 0 : i32
    return %c0_i32, %c0_i32_0 : i32, i32
  }
  func.func @transform_1(%arg0: i32) -> (i32, i32) {
    %c0_i32 = arith.constant 0 : i32
    %c0_i32_0 = arith.constant 0 : i32
    %c0_i32_1 = arith.constant 0 : i32
    return %c0_i32, %c0_i32_0 : i32, i32
  }
  func.func @transform_2(%arg0: i32) -> (i32, i32) {
    %c0_i32 = arith.constant 0 : i32
    %c0_i32_0 = arith.constant 0 : i32
    %c0_i32_1 = arith.constant 0 : i32
    return %c0_i32, %c0_i32_0 : i32, i32
  }
  func.func @transform_3(%arg0: i32) -> (i32, i32) {
    %c0_i32 = arith.constant 0 : i32
    %c0_i32_0 = arith.constant 0 : i32
    %c0_i32_1 = arith.constant 0 : i32
    return %c0_i32, %c0_i32_0 : i32, i32
  }
  func.func @transform_4(%arg0: i32) -> (i32, i32) {
    %c0_i32 = arith.constant 0 : i32
    %c0_i32_0 = arith.constant 0 : i32
    %c0_i32_1 = arith.constant 0 : i32
    return %c0_i32, %c0_i32_0 : i32, i32
  }
  func.func @transform_5(%arg0: i32) -> (i32, i32) {
    %c0_i32 = arith.constant 0 : i32
    %c0_i32_0 = arith.constant 0 : i32
    %c0_i32_1 = arith.constant 0 : i32
    return %c0_i32, %c0_i32_0 : i32, i32
  }
  func.func @transform_6(%arg0: i32) -> (i32, i32) {
    %c0_i32 = arith.constant 0 : i32
    %c0_i32_0 = arith.constant 0 : i32
    %c0_i32_1 = arith.constant 0 : i32
    return %c0_i32, %c0_i32_0 : i32, i32
  }
  func.func @transform_7(%arg0: i32) -> (i32, i32) {
    %c0_i32 = arith.constant 0 : i32
    %c0_i32_0 = arith.constant 0 : i32
    %c0_i32_1 = arith.constant 0 : i32
    return %c0_i32, %c0_i32_0 : i32, i32
  }
  func.func @transform_8(%arg0: i32) -> (i32, i32) {
    %c0_i32 = arith.constant 0 : i32
    %c0_i32_0 = arith.constant 0 : i32
    return %arg0, %c0_i32 : i32, i32
  }
  func.func @transform_9(%arg0: i32) -> (i32, i32) {
    %c0_i32 = arith.constant 0 : i32
    %c0_i32_0 = arith.constant 0 : i32
    return %arg0, %c0_i32 : i32, i32
  }
  func.func @transform_10(%arg0: i32) -> (i32, i32) {
    %c0_i32 = arith.constant 0 : i32
    %c0_i32_0 = arith.constant 0 : i32
    return %arg0, %c0_i32 : i32, i32
  }
  func.func @transform_11(%arg0: i32) -> (i32, i32) {
    %c0_i32 = arith.constant 0 : i32
    %c0_i32_0 = arith.constant 0 : i32
    return %arg0, %c0_i32 : i32, i32
  }
  func.func @transform_12(%arg0: i32) -> (i32, i32) {
    %c0_i32 = arith.constant 0 : i32
    %c0_i32_0 = arith.constant 0 : i32
    %c0_i32_1 = arith.constant 0 : i32
    return %c0_i32, %c0_i32_0 : i32, i32
  }
}

</mosaic_0001>

<bundles_post_ra>
// kernel: tpu_custom_call.1
= control target key start
LH: loop header
LB: loop body
LE: loop exit
PB: predicated region body
PF: predicated region fallthrough
CT: control target
= control target key end

     0   :  { %vm50_vm0 = vcmask 64512   ;;  %s1272_s0 = inlined_call_operand.vmem [shape: f32[16,8], index: 0, kind: input, shape index: {}]   ;;  %s1273_s1 = inlined_call_operand.vmem [shape: f32[8,16], index: 1, kind: input, shape index: {}]   ;;  %s1274_s2 = inlined_call_operand.vmem [shape: f32[16,2], index: 2, kind: input, shape index: {}]   ;;  %s1275_s3 = inlined_call_operand.vmem [shape: f32[16,2], index: 3, kind: input, shape index: {}]   ;;  %s1276_s4 = inlined_call_operand.vmem [shape: f32[2,16], index: 4, kind: input, shape index: {}]   ;;  %s1277_s5 = inlined_call_operand.vmem [shape: f32[16,16], index: 5, kind: input, shape index: {}]   ;;  %s1278_s6 = inlined_call_operand.vmem [shape: f32[16,16], index: 6, kind: input, shape index: {}]   ;;  %s1279_s7 = inlined_call_operand.vmem [shape: f32[1,16], index: 7, kind: input, shape index: {}]   ;;  %s1280_s8 = inlined_call_operand.vmem [shape: bf16[24,16], index: 8, kind: input, shape index: {}]   ;;  %s1281_s9 = inlined_call_operand.vmem [shape: bf16[24,16], index: 9, kind: input, shape index: {}]   ;;  %s1282_s10 = inlined_call_operand.vmem [shape: f32[24,16], index: 10, kind: input, shape index: {}]   ;;  %s1283_s11 = inlined_call_operand.vmem [shape: f32[24,1], index: 11, kind: input, shape index: {}]   ;;  %s1284_s12 = inlined_call_operand.hbm [shape: f32[16,16], index: 12, kind: output, shape index: {}]  }
   0x1   :  { %v49_v0 = vld [vmem:[%s1273_s1] sm:$0xff]  ;;  %v48_v2 = vld [vmem:[%s1272_s0 + $0x8] sm:$0xff] }
   0x2   :  { %v47_v1 = vld [vmem:[%s1272_s0] sm:$0xff]  ;;  %930 = vmatprep.subr.mxu0 %v49_v0  ;;  %v138_v4 = vld [vmem:[%s1275_s3 + $0x8] sm:$0xff] }
   0x3   :  { %932 = vmatprep.mubr.msk.f32.mxu0 %vm50_vm0, %v47_v1  ;;  %v137_v3 = vld [vmem:[%s1275_s3] sm:$0xff]  ;;  %931 = vmatpush3.msra.mxu0 %v49_v0 }
   0x4   :  { %v1000_v5 = vpack.c.bf16 %v138_v4, %v137_v3  ;;  %933 = vmatmul.mubr.msk.f32.vlgmr.msra.gmra.mrb[0].mxu0 %vm50_vm0, %v48_v2 }
   0x5   :  { %17 = vsyncpa [#allocation7], 0  ;;  %v1026_v6 = vld [vmem:[%s1280_s8] sm:$0xff]   ;;  %vm132_vm1 = vcmask 130048   ;;  %v1027_v11 = vld [vmem:[%s1280_s8 + $0x8] ss:$0 sps:$4 sm:$0xff]  }
   0x6   :  { %1001 = vmatprep.subr.bf16.mxu1 %v1000_v5  ;;  %944 = vmatprep.mubr.msk.bf16.mxu0 %vm132_vm1, %v1026_v6  ;;  %v1066_v12 = vmov 0.0|0.0   ;;  %v295_v13 = vld [vmem:[%s1274_s2] sm:$0xff]  ;;  %v296_v14 = vld [vmem:[%s1274_s2 + $0x8] sm:$0xff]  ;;  %vm1067_vm2 = vmmov 0   ;;  %v1068_v17 = vmov 0.0   ;;  %v451_v19 = vld [vmem:[%s1283_s11 + $0x10] sm:$0xff] }
   0x7   :  { %1003 = vmatpush3.bf16.msra.mxu1 %v1000_v5  ;;  %v1005_v15 = vpack.c.bf16 %v296_v14, %v295_v13  ;;  %v1028_v16 = vld [vmem:[%s1281_s9] sm:$0xff]   ;;  %223 = vst.msk [vmem:[#allocation5] sm:$0xff] %vm132_vm1, %v1068_v17  ;;  %224 = vst.msk [vmem:[#allocation5 + $0x8] sm:$0xff] %vm132_vm1, %v1068_v17  ;;  %v1069_v20 = vmov 0   ;;  %v450_v21 = vld [vmem:[%s1283_s11 + $0x8] sm:$0xff]  ;;  %vm221_vm3 = vcmask 15360  }
   0x8   :  { %v449_v18 = vld [vmem:[%s1283_s11] sm:$0xff]  ;;  %1024 = vset.pattern.permute.xlu0 %v1069_v20  ;;  %1025 = vset.pattern.permute.xlu1 %v1069_v20  ;;  %v1029_v22 = vld [vmem:[%s1281_s9 + $0x8] ss:$0 sps:$4 sm:$0xff]   ;;  %vm499_vm4 = vcmask 1041408   ;;  %vm618_vm5 = vcmask 1043456   ;;  %vm614_vm6 = vcmask 195584  }
   0x9   :  { %454 = vperm.xlu0 %1024, %v449_v18   ;;  %464 = vperm.xlu1 %1025, %v451_v19   ;;  %v488_v31 = vld [vmem:[%s1276_s4] sm:$0x3]  ;;  %v584_v3 = vld [vmem:[%s1282_s10 + $0x8] sm:$0xff]  ;;  %s1070_s17 = smov [#allocation6]  }
   0xa   :  { %v583_v63 = vld [vmem:[%s1282_s10] sm:$0xff]  ;;  %v677_v20 = vld [vmem:[%s1278_s6 + $0x8] sm:$0xff]  ;;  %s858_s18 = sshll.u32 %s1070_s17, 4  ;;  %s859_s18 = int_to_ptr.vmem [resolvable:$true] %s858_s18 }
   0xb   :  { %v676_v19 = vld [vmem:[%s1278_s6] sm:$0xff]  ;;  %s1042_s19 = scalar_lea.vmem %s859_s18, 256  ;;  %p1047_p1 = scmp.lt.s32.totalorder %s859_s18, %s859_s18 }
   0xc   :  { %p1043_p0 = scmp.ne.s32.totalorder %s859_s18, %s1042_s19  ;;  %p1048_p2 = scmp.lt.s32.totalorder %s1042_s19, %s1042_s19 }
   0xd   :  { %459 = vperm.xlu0 %1024, %v450_v21   ;;  %v1007_v21 = vpack.c.bf16 %v677_v20, %v676_v19 }
   0xe   :  { %p1049_p3 = por %p1048_p2, %p1047_p1 }
  0x10   :  { %p1050_p4 = pnand %p1049_p3, %p1043_p0 }
  0x2c   :  { %598 = vxpose.xlu1.c.b16.start [1/2] (short) (narrow) %v1028_v16, 16 }
  0x30   :  { %599 = vxpose.xlu1.c.b16.end [2/2] (short) (narrow) %v1029_v22, 16 }
  0x88   :  { %v455_v32 = vpop.permute.xlu0 %454  ;;  %v465_v48 = vpop.permute.xlu1 %464 }
  0x8c   :  { %v460_v44 = vpop.permute.xlu0 %459 }
  0x92   :  { %v606_v18 = vpop.trf.xlu1 }
  0xd7   :  { %v934_v7 = vpop.f32.mrb[0].mxu0 }
  0xd8   :  { %134 = vst.msk [vmem:[#allocation2 + $0x8] sm:$0xff] %vm132_vm1, %v934_v7  ;;  %v123_v8 = vpop.f32.mrb[1].mxu0 }
  0xd9   :  { %133 = vst.msk [vmem:[#allocation2] sm:$0xff] %vm132_vm1, %v123_v8  ;;  %v135_v9 = vpack.c.bf16 %v934_v7, %v123_v8  ;;  %939 = vmatprep.mubr.msk.f32.mxu1 %vm132_vm1, %v123_v8  ;;  %v585_v8 = vld [vmem:[%s1282_s10 + $0x10] sm:$0xff] }
  0xda   :  { %940 = vmatmul.mubr.msk.f32.vlgmr.msra.gmra.mrb[0].mxu1 %vm132_vm1, %v934_v7 }
  0xdb   :  { %136 = vst.msk [vmem:[#allocation3] sm:$0xff] %vm132_vm1, %v135_v9  ;;  %950 = vmatprep.mubr.msk.bf16.mxu1 %vm132_vm1, %v1028_v16 }
  0xe2   :  { %v231_v10 = vld [vmem:[#allocation3] sm:$0xff] }
  0xe3   :  { %942 = vmatprep.subr.bf16.mxu0 %v231_v10 }
  0xe4   :  { %943 = vmatpush3.bf16.msra.mxu0 %v231_v10 }
  0xe5   :  { %1004 = vmatprep.subr.bf16.mxu0 %v1066_v12 }
  0xe7   :  { %945 = vmatmul.mubr.msk.bf16.vlgmr.msra.gmra.mrb[4].mxu0 %vm132_vm1, %v1027_v11 }
  0xe8   :  { %1006 = vmatpush3.bf16.msra.mxu0 %v1005_v15  ;;  %958 = vmatprep.mubr.msk.f32.mxu0 %vm1067_vm2, %v1068_v17 }
  0xe9   :  { %978 = vmatprep.subr.bf16.mxu0 %v1068_v17 }
 0x1ad   :  { %v941_v23 = vpop.f32.mrb[0].mxu1 }
 0x1ae   :  { %v211_v24 = vpop.f32.mrb[1].mxu1 }
 0x1af   :  { %v220_v25 = vpack.c.bf16 %v941_v23, %v211_v24  ;;  %v594_v24 = vld [vmem:[#allocation5] sm:$0xff] }
 0x1b1   :  { %222 = vst.msk [vmem:[#allocation4] sm:$0xff] %vm221_vm3, %v220_v25 }
 0x1b8   :  { %v297_v26 = vld [vmem:[#allocation4] sm:$0xff] }
 0x1b9   :  { %948 = vmatprep.subr.bf16.mxu1 %v297_v26 }
 0x1ba   :  { %v1196_v27 = vpop.f32.mrb[4].mxu0  ;;  %949 = vmatpush3.bf16.msra.mxu1 %v297_v26  ;;  %v595_v26 = vld [vmem:[#allocation5 + $0x8] sm:$0xff] }
 0x1bb   :  { %v281_v28 = vpop.f32.mrb[5].mxu0  ;;  %967 = vmatprep.subr.mxu1 %v1068_v17 }
 0x1bc   :  { %v947_v29 = vpop.f32.mrb[6].mxu0  ;;  %959 = vmatmul.mubr.msk.f32.vlgmr.msra.gmra.mrb[2].mxu0 %vm132_vm1, %v281_v28 }
 0x1bd   :  { %v1200_v30 = vpop.f32.mrb[7].mxu0  ;;  %951 = vmatmul.mubr.msk.bf16.vlgmr.msra.gmra.mrb[4].mxu1 %vm132_vm1, %v1029_v22  ;;  %961 = vmatprep.mubr.msk.f32.mxu0 %vm1067_vm2, %v1068_v17  ;;  %v673_v22 = vld [vmem:[%s1277_s5 + $0x8] sm:$0xff] }
 0x1be   :  { %969 = vmatprep.mubr.msk.f32.mxu1 %vm1067_vm2, %v1068_v17  ;;  %968 = vmatpush3.msk.msra.mxu1 %vm499_vm4, %v488_v31 }
 0x1bf   :  { %1008 = vmatprep.subr.bf16.mxu1 %v1007_v21 }
 0x1c0   :  { %962 = vmatmul.mubr.msk.f32.gmra.mrb[8].mxu0 %vm132_vm1, %v1200_v30 }
 0x1c1   :  { %964 = vmatprep.mubr.msk.f32.mxu0 %vm1067_vm2, %v1068_v17 }
 0x1c4   :  { %965 = vmatmul.mubr.msk.f32.gmra.mrb[10].mxu0 %vm132_vm1, %v1196_v27 }
 0x1c5   :  { %982 = vmatprep.mubr.msk.bf16.mxu0 %vm1067_vm2, %v1068_v17 }
 0x28f   :  { %v435_v33 = vpop.f32.mrb[2].mxu0 }
 0x290   :  { %v952_v34 = vpop.f32.mrb[4].mxu1  ;;  %v960_v35 = vpop.f32.mrb[3].mxu0 }
 0x291   :  { %v346_v36 = vpop.f32.mrb[5].mxu1  ;;  %v671_v35 = vld [vmem:[#allocation2 + $0x8] sm:$0xff] }
 0x292   :  { %v436_v37 = vadd.f32 %v435_v33, %v346_v36  ;;  %v953_v38 = vpop.f32.mrb[6].mxu1  ;;  %v896_v36 = vld [vmem:[%s1279_s7] ss:$0 sm:$0xff] }
 0x293   :  { %v349_v39 = vpop.f32.mrb[7].mxu1  ;;  %v440_v40 = vpop.f32.mrb[8].mxu0 }
 0x294   :  { %v467_v41 = vadd.f32 %v455_v32, %v436_v37  ;;  %v441_v42 = vadd.f32 %v440_v40, %v349_v39  ;;  %v963_v43 = vpop.f32.mrb[9].mxu0 }
 0x296   :  { %v884_v45 = vmul.f32 -1.442695, %v467_v41  ;;  %v468_v46 = vadd.f32 %v460_v44, %v441_v42 }
 0x297   :  { %v445_v47 = vpop.f32.mrb[10].mxu0 }
 0x298   :  { %1030 = vpow2.f32 %v884_v45  ;;  %v885_v49 = vmul.f32 -1.442695, %v468_v46  ;;  %v446_v50 = vadd.f32 %v952_v34, %v445_v47  ;;  %v966_v51 = vpop.f32.mrb[11].mxu0  ;;  %v670_v34 = vld [vmem:[#allocation2] sm:$0xff] }
 0x29a   :  { %1032 = vpow2.f32 %v885_v49  ;;  %v469_v52 = vadd.f32 %v465_v48, %v446_v50 }
 0x29c   :  { %v886_v53 = vmul.f32 -1.442695, %v469_v52 }
 0x29e   :  { %1034 = vpow2.f32 %v886_v53 }
 0x2a2   :  { %v1031_v54 = vpop.eup %1030 }
 0x2a3   :  { %v479_v55 = vadd.f32 1.0, %v1031_v54 }
 0x2a4   :  { %v1033_v56 = vpop.eup %1032 }
 0x2a5   :  { %1036 = vrcp.f32 %v479_v55  ;;  %v480_v57 = vadd.f32 1.0, %v1033_v56 }
 0x2a7   :  { %1038 = vrcp.f32 %v480_v57 }
 0x2a8   :  { %v1035_v58 = vpop.eup %1034 }
 0x2a9   :  { %v481_v59 = vadd.f32 1.0, %v1035_v58 }
 0x2ab   :  { %1040 = vrcp.f32 %v481_v59 }
 0x2af   :  { %v1037_v60 = vpop.eup %1036 }
 0x2b0   :  { %970 = vmatmul.mubr.msk.f32.vlgmr.msra.gmra.mrb[2].mxu1 %vm221_vm3, %v1037_v60 }
 0x2b1   :  { %972 = vmatprep.mubr.msk.f32.mxu1 %vm1067_vm2, %v1068_v17  ;;  %v1039_v61 = vpop.eup %1038  ;;  %1010 = vmatpush3.bf16.msra.mxu1 %v1007_v21 }
 0x2b4   :  { %973 = vmatmul.mubr.msk.f32.gmra.mrb[8].mxu1 %vm221_vm3, %v1039_v61 }
 0x2b5   :  { %975 = vmatprep.mubr.msk.f32.mxu1 %vm1067_vm2, %v1068_v17  ;;  %v1041_v62 = vpop.eup %1040 }
 0x2b8   :  { %976 = vmatmul.mubr.msk.f32.gmra.mrb[10].mxu1 %vm221_vm3, %v1041_v62 }
 0x383   :  { %v569_v0 = vpop.f32.mrb[2].mxu1 }
 0x384   :  { %v586_v1 = vmul.f32 %v583_v63, %v569_v0  ;;  %v971_v2 = vpop.f32.mrb[3].mxu1 }
 0x386   :  { %v589_v4 = vmul.f32 %v586_v1, %v281_v28 }
 0x387   :  { %v574_v5 = vpop.f32.mrb[8].mxu1 }
 0x388   :  { %v587_v6 = vmul.f32 %v584_v3, %v574_v5  ;;  %v974_v7 = vpop.f32.mrb[9].mxu1 }
 0x38a   :  { %v590_v9 = vmul.f32 %v587_v6, %v1200_v30 }
 0x38b   :  { %v579_v10 = vpop.f32.mrb[10].mxu1 }
 0x38c   :  { %v592_v11 = vpack.c.bf16 %v590_v9, %v589_v4  ;;  %v588_v12 = vmul.f32 %v585_v8, %v579_v10  ;;  %v977_v13 = vpop.f32.mrb[11].mxu1 }
 0x38e   :  { %v591_v14 = vmul.f32 %v1196_v27, %v588_v12  ;;  %979 = vmatpush3.bf16.msra.mxu0 %v592_v11 }
 0x38f   :  { %980 = vmatprep.subr.bf16.mxu0 %v1068_v17  ;;  %v672_v17 = vld [vmem:[%s1277_s5] sm:$0xff] }
 0x390   :  { %v593_v15 = vpack.c.bf16 %v591_v14, %v591_v14  ;;  %v1011_v23 = vpack.c.bf16 %v673_v22, %v672_v17 }
 0x392   :  { %v620_v16 = vsel %vm618_vm5, %v593_v15, 0  ;;  %1012 = vmatprep.subr.bf16.mxu1 %v1011_v23 }
 0x393   :  { %981 = vmatpush3.bf16.msra.mxu0 %v620_v16 }
 0x396   :  { %983 = vmatmul.mubr.msk.bf16.vlgmr.msra.gmra.mrb[12].mxu0 %vm614_vm6, %v606_v18 }
 0x469   :  { %v656_v25 = vpop.f32.mrb[12].mxu0 }
 0x46a   :  { %v663_v27 = vadd.f32 %v656_v25, %v594_v24  ;;  %v984_v28 = vpop.f32.mrb[13].mxu0 }
 0x46b   :  { %v659_v29 = vpop.f32.mrb[14].mxu0 }
 0x46c   :  { %665 = vst.msk [vmem:[#allocation5] sm:$0xff] %vm132_vm1, %v663_v27  ;;  %v664_v30 = vadd.f32 %v659_v29, %v595_v26  ;;  %v985_v31 = vpop.f32.mrb[15].mxu0 }
 0x46e   :  { %666 = vst.msk [vmem:[#allocation5 + $0x8] sm:$0xff] %vm132_vm1, %v664_v30 }
 0x473   :  { %v674_v32 = vld [vmem:[#allocation5] sm:$0xff] }
 0x474   :  { %990 = vmatprep.mubr.msk.f32.mxu1 %vm132_vm1, %v674_v32 }
 0x475   :  { %v675_v33 = vld [vmem:[#allocation5 + $0x8] sm:$0xff] }
 0x476   :  { %991 = vmatmul.mubr.msk.f32.vlgmr.msra.gmra.mrb[12].mxu1 %vm132_vm1, %v675_v33 }
 0x477   :  { %997 = vmatprep.mubr.msk.f32.mxu1 %vm132_vm1, %v670_v34  ;;  %1014 = vmatpush3.bf16.msra.mxu1 %v1011_v23 }
 0x47e   :  { %998 = vmatmul.mubr.msk.f32.vlgmr.msra.gmra.mrb[12].mxu1 %vm132_vm1, %v671_v35 }
 0x551   :  { %v999_v37 = vpop.f32.mrb[12].mxu1 }
 0x552   :  { %v848_v38 = vadd.f32 %v999_v37, %v896_v36  ;;  %v831_v39 = vpop.f32.mrb[13].mxu1 }
 0x553   :  { %v847_v40 = vadd.f32 %v896_v36, %v831_v39 }
 0x554   :  { %v850_v41 = vadd.f32 %v848_v38, %v671_v35 }
 0x555   :  { %v849_v42 = vadd.f32 %v847_v40, %v670_v34 }
 0x556   :  { %852 = vst.msk [vmem:[#allocation6 + $0x8] sm:$0xff] %vm132_vm1, %v850_v41 }
 0x557   :  { %851 = vst.msk [vmem:[#allocation6] sm:$0xff] %vm132_vm1, %v849_v42 }
 0x558   :  { %1053 = shalt.err (!%p1050_p4)
}
 0x559   :  { %s1054_s8 = scalar_lea.hbm %s1284_s12, 256 }
 0x55a   :  { %p1055_p5 = scmp.ne.s32.totalorder %s1284_s12, %s1054_s8  ;;  %p1058_p6 = scmp.lt.u32.totalorder %s1054_s8, %s1284_s12 }
 0x55c   :  { %p1060_p7 = pnand %p1058_p6, %p1055_p5 }
 0x55e   :  { %1063 = shalt.err (!%p1060_p7)
}
 0x55f   :  { %s1071_s24 = smov 128   ;;  %s1072_s25 = smov 8  }
 0x560   :  { %864 = dma.vmem_to_hbm [thread:$0]  %s859_s18, 256, %s1284_s12, [#allocation7], %s1071_s24, %s1071_s24, %s1072_s25  }
 0x561   :  { %1064 = dma.done.wait [#allocation7], 256  }
 0x562   :  { %1065 = vsyncadd [#allocation7], 4294967040 }
 0x563   :  { %868 = vsyncpa [#allocation7], 1 }

</bundles_post_ra>
